<compile_context>
chip_gen: v7x
topology: tpu7x:2x2x1
jax: 0.10.0
libtpu: 0.0.40
codegen_flags: <defaults>
</compile_context>

<pallas_src>
import functools

import jax
import jax.numpy as jnp
from jax import lax
from jax.experimental import pallas as pl
from jax.experimental.pallas import tpu as pltpu

LANE = 128


def _round_up(v, m):
    return (v + m - 1) // m * m


def _pad2(a, shape):
    return jnp.pad(a, [(0, shape[i] - a.shape[i]) for i in range(a.ndim)])


def _tpu_vmem_capacity():
    try:
        info = pltpu.get_tpu_info()
        for attr in ("vmem_capacity_bytes", "vmem_bytes"):
            v = getattr(info, attr, None)
            if v:
                return int(v)
    except Exception:
        pass
    return 64 << 20  # conservative (v7x per-TC VMEM)


def _vmem_limit(need_bytes):
    cap = _tpu_vmem_capacity()
    hi = min(int(cap * 3 // 4), 100 << 20)      # ~48 MiB on v7x, ~96 MiB on v5e/v6e
    need = int(need_bytes) + (4 << 20)          # headroom
    return int(min(max(need, 16 << 20), hi))


def _pick_row_tile(n_rows, target):
    """Largest multiple of LANE <= target that keeps row padding of n_rows small."""
    target = max(LANE, min(_round_up(target, LANE), n_rows))
    for cand in range(target, LANE - 1, -LANE):
        if _round_up(n_rows, cand) - n_rows <= n_rows // 8:
            return cand
    return LANE


# ----------------------------- kernels -----------------------------------------


def _xw_kernel(x_ref, w_ref, o_ref):
    # XW12 = x @ W12 for one row tile; bf16 output (streamed into the A aggregation).
    o_ref[...] = jnp.dot(x_ref[...], w_ref[...],
                         preferred_element_type=jnp.float32).astype(o_ref.dtype)


def _agg_bias_kernel(a_ref, s_ref, b_ref, o_ref, acc_ref):
    # Accumulate A @ S over the K (source-node) grid axis; finalize is just a bias add.
    k = pl.program_id(1)

    @pl.when(k == 0)
    def _():
        acc_ref[...] = jnp.zeros_like(acc_ref)

    a = a_ref[...].astype(jnp.bfloat16)   # int8/bf16 storage -> bf16 MXU operand
    acc_ref[...] += jnp.dot(a, s_ref[...], preferred_element_type=jnp.float32)

    @pl.when(k == pl.num_programs(1) - 1)
    def _():
        o_ref[...] = (acc_ref[...] + b_ref[...]).astype(o_ref.dtype)


def _agg_head_kernel(a_ref, s_ref, b_ref, wl_ref, bl_ref, o_ref, acc_ref, *, valid_cols):
    # Accumulate A @ H1W2; at k==last add b2 and run the fused (folded) linear head +
    # masked softmax epilogue on the lane-dense [tm, out_p] row tile.
    k = pl.program_id(1)

    @pl.when(k == 0)
    def _():
        acc_ref[...] = jnp.zeros_like(acc_ref)

    a = a_ref[...].astype(jnp.bfloat16)
    acc_ref[...] += jnp.dot(a, s_ref[...], preferred_element_type=jnp.float32)

    @pl.when(k == pl.num_programs(1) - 1)
    def _():
        h2 = (acc_ref[...] + b_ref[...]).astype(jnp.bfloat16)
        z = jnp.dot(h2, wl_ref[...], preferred_element_type=jnp.float32) + bl_ref[...]
        # Mask padded logit columns so they do not perturb the softmax denominator.
        col = lax.broadcasted_iota(jnp.int32, z.shape, 1)
        z = jnp.where(col < valid_cols, z, -1e30)
        z = z - jnp.max(z, axis=-1, keepdims=True)
        e = jnp.exp(z)
        inv = pl.reciprocal(jnp.sum(e, axis=-1, keepdims=True), approx=True)
        o_ref[...] = e * inv


# ----------------------------- wrapper ------------------------------------------


def gcn_forward(x, edge_index, params, edge_weight=None, *, tm=1024, tk=2048):
    """x: [N, Cin] float32; edge_index: [2, E] int32; params: dict of weights."""
    n, cin = x.shape
    hidden = params["W1"].shape[1]
    out_c = params["Wl2"].shape[1]

    # Lane-pad every feature dim to a multiple of 128 (MXU / vst lane density).
    cin_p = _round_up(cin, LANE)
    hid_p = _round_up(hidden, LANE)
    out_p = _round_up(out_c, LANE)

    # Row / K tiling of the dense adjacency.
    n_min = _round_up(n, LANE)
    tm_target = tm
    if n_min >= 2 * LANE:
        # keep >= 2 row tiles so both TensorCores get work on v7x megacore
        tm_target = min(tm_target, _round_up(-(-n_min // 2), LANE))
    tm = _pick_row_tile(n_min, tm_target)
    n_p = _round_up(n_min, tm)
    gm = n_p // tm
    # tk: largest multiple of tm that divides n_p and does not exceed the target.
    d = 1
    for cand in range(max(1, min(tk // tm, gm)), 0, -1):
        if gm % cand == 0:
            d = cand
            break
    tk = d * tm
    gk = n_p // tk

    # Dense adjacency, A[dst, src] = w (messages j -> i aggregated at i = dst), built
    # directly in its streaming dtype: int8 for the unweighted default (halves A HBM
    # traffic, upcast to bf16 in-kernel), bf16 otherwise. Padded rows/cols stay zero.
    num_e = edge_index.shape[1]
    if edge_weight is None:
        adj = jnp.zeros((n_p, n_p), jnp.int8).at[edge_index[1], edge_index[0]].add(
            jnp.ones((num_e,), jnp.int8))
    else:
        adj = jnp.zeros((n_p, n_p), jnp.bfloat16).at[edge_index[1], edge_index[0]].add(
            edge_weight.astype(jnp.bfloat16))
    a_bytes = jnp.dtype(adj.dtype).itemsize

    # Fold weights offline (no nonlinearities between layers => exact up to fp rounding).
    w12 = params["W1"] @ params["W2"]                         # [cin, hid]
    c1 = params["b1"] @ params["W2"]                          # [1, hid]
    wl = params["Wl1"] @ params["Wl2"]                        # [hid, out]
    bl = params["bl1"] @ params["Wl2"] + params["bl2"]        # [1, out]

    xp = _pad2(x, (n_p, cin_p)).astype(jnp.bfloat16)
    w12_p = _pad2(w12, (cin_p, hid_p)).astype(jnp.bfloat16)
    c1_p = _pad2(c1, (1, hid_p)).astype(jnp.float32)
    b2_p = _pad2(params["b2"], (1, hid_p)).astype(jnp.float32)
    wl_p = _pad2(wl, (hid_p, out_p)).astype(jnp.bfloat16)
    bl_p = _pad2(bl, (1, out_p)).astype(jnp.float32)

    # ---- phase 1: XW12 = x @ W12 (row-tiled, W12 resident) ------------------------
    vmem1 = _vmem_limit(2 * (tm * cin_p * 2 + cin_p * hid_p * 2 + tm * hid_p * 2))
    xw12 = pl.pallas_call(
        _xw_kernel,
        out_shape=jax.ShapeDtypeStruct((n_p, hid_p), jnp.bfloat16),
        grid=(gm,),
        in_specs=[pl.BlockSpec((tm, cin_p), lambda i: (i, 0)),
                  pl.BlockSpec((cin_p, hid_p), lambda i: (0, 0))],
        out_specs=pl.BlockSpec((tm, hid_p), lambda i: (i, 0)),
        compiler_params=pltpu.CompilerParams(
            dimension_semantics=("parallel",),
            vmem_limit_bytes=vmem1),
    )(xp, w12_p)

    # ---- phase 2: H1W2 = A @ XW12 + c1 --------------------------------------------
    vmem2 = _vmem_limit(2 * (tm * tk * a_bytes + tk * hid_p * 2 + hid_p * 4
                             + tm * hid_p * 2)
                        + tm * hid_p * 4)
    h1w2 = pl.pallas_call(
        _agg_bias_kernel,
        out_shape=jax.ShapeDtypeStruct((n_p, hid_p), jnp.bfloat16),
        grid=(gm, gk),
        in_specs=[pl.BlockSpec((tm, tk), lambda i, k: (i, k)),        # A tile (int8/bf16)
                  pl.BlockSpec((tk, hid_p), lambda i, k: (k, 0)),     # XW12 tile (bf16)
                  pl.BlockSpec((1, hid_p), lambda i, k: (0, 0))],     # c1 (resident)
        out_specs=pl.BlockSpec((tm, hid_p), lambda i, k: (i, 0)),
        scratch_shapes=[pltpu.VMEM((tm, hid_p), jnp.float32)],
        compiler_params=pltpu.CompilerParams(
            dimension_semantics=("parallel", "arbitrary"),
            vmem_limit_bytes=vmem2),
    )(adj, xw12, c1_p)

    # ---- phase 3: softmax((A @ H1W2 + b2) @ Wl + bl) -------------------------------
    vmem3 = _vmem_limit(2 * (tm * tk * a_bytes + tk * hid_p * 2 + hid_p * 4
                             + hid_p * out_p * 2 + out_p * 4 + tm * out_p * 4)
                        + tm * hid_p * 4)
    out_pad = pl.pallas_call(
        functools.partial(_agg_head_kernel, valid_cols=out_c),
        out_shape=jax.ShapeDtypeStruct((n_p, out_p), jnp.float32),
        grid=(gm, gk),
        in_specs=[pl.BlockSpec((tm, tk), lambda i, k: (i, k)),        # A tile (int8/bf16)
                  pl.BlockSpec((tk, hid_p), lambda i, k: (k, 0)),     # H1W2 tile (bf16)
                  pl.BlockSpec((1, hid_p), lambda i, k: (0, 0)),      # b2
                  pl.BlockSpec((hid_p, out_p), lambda i, k: (0, 0)),  # Wl (folded, bf16)
                  pl.BlockSpec((1, out_p), lambda i, k: (0, 0))],     # bl (folded)
        out_specs=pl.BlockSpec((tm, out_p), lambda i, k: (i, 0)),
        scratch_shapes=[pltpu.VMEM((tm, hid_p), jnp.float32)],
        compiler_params=pltpu.CompilerParams(
            dimension_semantics=("parallel", "arbitrary"),
            vmem_limit_bytes=vmem3),
    )(adj, h1w2, b2_p, wl_p, bl_p)

    return out_pad[:n, :out_c]


# ----------------------------- references / params --------------------------------


def _reference_mirror(x, edge_index, params, edge_weight=None):
    """Pure-JAX reference mirroring the kernel's numerics (folded weights, bf16 casts)."""
    n = x.shape[0]
    ew = jnp.ones((edge_index.shape[1],), jnp.float32) if edge_weight is None else edge_weight
    a = jnp.zeros((n, n), jnp.float32).at[edge_index[1], edge_index[0]].add(ew)
    a = a.astype(jnp.bfloat16)
    w12 = (params["W1"] @ params["W2"]).astype(jnp.bfloat16)
    c1 = params["b1"] @ params["W2"]
    wl = (params["Wl1"] @ params["Wl2"]).astype(jnp.bfloat16)
    bl = params["bl1"] @ params["Wl2"] + params["bl2"]
    xw12 = jnp.dot(x.astype(jnp.bfloat16), w12,
                   preferred_element_type=jnp.float32).astype(jnp.bfloat16)
    h1w2 = (jnp.dot(a, xw12, preferred_element_type=jnp.float32) + c1).astype(jnp.bfloat16)
    h2 = (jnp.dot(a, h1w2, preferred_element_type=jnp.float32) + params["b2"]).astype(jnp.bfloat16)
    z = jnp.dot(h2, wl, preferred_element_type=jnp.float32) + bl
    return jax.nn.softmax(z, axis=-1)


def _reference_exact(x, edge_index, params, edge_weight=None):
    """Pure-f32 module semantics (GCNConv add-aggregation, no normalization)."""
    n = x.shape[0]
    ew = jnp.ones((edge_index.shape[1],), jnp.float32) if edge_weight is None else edge_weight
    a = jnp.zeros((n, n), jnp.float32).at[edge_index[1], edge_index[0]].add(ew)
    h1 = a @ (x @ params["W1"]) + params["b1"]
    h2 = a @ (h1 @ params["W2"]) + params["b2"]
    z = (h2 @ params["Wl1"] + params["bl1"]) @ params["Wl2"] + params["bl2"]
    return jax.nn.softmax(z, axis=-1)


def init_params(key, in_channels, hidden_channels, out_channels):
    """Deterministic synthetic parameters (shapes match the PyTorch module)."""
    ks = jax.random.split(key, 8)
    h2 = hidden_channels // 2

    def glorot(k, shape):
        fan_in, fan_out = shape
        lim = jnp.sqrt(6.0 / (fan_in + fan_out))
        return jax.random.uniform(k, shape, jnp.float32, -lim, lim)

    return {
        # GCNConv weights stored as [in, out] so the kernel does x @ W
        "W1": glorot(ks[0], (in_channels, hidden_channels)),
        "b1": jax.random.normal(ks[1], (1, hidden_channels), jnp.float32) * 0.01,
        "W2": glorot(ks[2], (hidden_channels, hidden_channels)),
        "b2": jax.random.normal(ks[3], (1, hidden_channels), jnp.float32) * 0.01,
        # nn.Linear weights stored transposed ([in, out]) for x @ W
        "Wl1": glorot(ks[4], (hidden_channels, h2)),
        "bl1": jax.random.normal(ks[5], (1, h2), jnp.float32) * 0.01,
        "Wl2": glorot(ks[6], (h2, out_channels)),
        "bl2": jax.random.normal(ks[7], (1, out_channels), jnp.float32) * 0.01,
    }


if __name__ == "__main__":
    key = jax.random.PRNGKey(0)
    k_x, k_e, k_p = jax.random.split(key, 3)

    num_nodes = 16
    in_channels = 8
    hidden_channels = 32
    out_channels = 4
    num_edges = 32

    x = jax.random.normal(k_x, (num_nodes, in_channels), jnp.float32)
    edge_index = jax.random.randint(k_e, (2, num_edges), 0, num_nodes, jnp.int32)
    params = init_params(k_p, in_channels, hidden_channels, out_channels)

    out = gcn_forward(x, edge_index, params)
    out = jax.block_until_ready(out)

    assert out.shape == (num_nodes, out_channels)
    # softmax rows sum to 1 (approx reciprocal -> loose tolerance)
    assert bool(jnp.allclose(jnp.sum(out, axis=-1), 1.0, atol=5e-3))
    # match the mirrored pure-JAX reference (same bf16 casts / folded weights)
    ref = _reference_mirror(x, edge_index, params)
    assert bool(jnp.allclose(out, ref, atol=5e-3, rtol=5e-3))
    # and stay close to the exact f32 module semantics
    ref_exact = _reference_exact(x, edge_index, params)
    assert bool(jnp.allclose(out, ref_exact, atol=3e-2, rtol=3e-2))
    print("KERNEL_OK")
</pallas_src>

<mosaic_0001>
module attributes {stable_mosaic.version = 11 : i64} {
  func.func @_xw_kernel(%arg0: i32, %arg1: memref<128x128xbf16, #tpu.memory_space<vmem>>, %arg2: memref<128x128xbf16, #tpu.memory_space<vmem>>, %arg3: memref<128x128xbf16, #tpu.memory_space<vmem>>) attributes {dimension_semantics = [#tpu.dimension_semantics<parallel>], iteration_bounds = array<i64: 1>, scalar_prefetch = 0 : i64, scratch_operands = 0 : i64, tpu.core_type = #tpu.core_type<tc>, window_params = [{transform_indices = @transform_0, window_bounds = array<i64: 128, 128>}, {pipeline_mode = #tpu.pipeline_mode<synchronous>, transform_indices = @transform_1, window_bounds = array<i64: 128, 128>}, {transform_indices = @transform_2, window_bounds = array<i64: 128, 128>}]} {
    %c0 = arith.constant 0 : index
    %c0_0 = arith.constant 0 : index
    %0 = vector.load %arg1[%c0, %c0_0] : memref<128x128xbf16, #tpu.memory_space<vmem>>, vector<128x128xbf16>
    %c0_1 = arith.constant 0 : index
    %c0_2 = arith.constant 0 : index
    %1 = vector.load %arg2[%c0_1, %c0_2] : memref<128x128xbf16, #tpu.memory_space<vmem>>, vector<128x128xbf16>
    %cst = arith.constant dense<0.000000e+00> : vector<128x128xf32>
    %2 = tpu.matmul %0, %1, %cst {dimension_numbers = #tpu.dot_dimension_numbers<[1], [0], [0], [1], [0, 0, 1, 1], [], []>} : vector<128x128xbf16>, vector<128x128xbf16>, vector<128x128xf32> -> vector<128x128xf32>
    %3 = arith.truncf %2 : vector<128x128xf32> to vector<128x128xbf16>
    %c0_3 = arith.constant 0 : index
    %c0_4 = arith.constant 0 : index
    %4 = vector.load %arg3[%c0_3, %c0_4] : memref<128x128xbf16, #tpu.memory_space<vmem>>, vector<128x128xbf16>
    tpu.vector_store %arg3[%c0_3, %c0_4], %3 {strides = array<i32>} : memref<128x128xbf16, #tpu.memory_space<vmem>>, vector<128x128xbf16>,
    return
  }
  func.func @transform_0(%arg0: i32) -> (i32, i32) {
    %c0_i32 = arith.constant 0 : i32
    %c0_i32_0 = arith.constant 0 : i32
    return %arg0, %c0_i32 : i32, i32
  }
  func.func @transform_1(%arg0: i32) -> (i32, i32) {
    %c0_i32 = arith.constant 0 : i32
    %c0_i32_0 = arith.constant 0 : i32
    %c0_i32_1 = arith.constant 0 : i32
    return %c0_i32, %c0_i32_0 : i32, i32
  }
  func.func @transform_2(%arg0: i32) -> (i32, i32) {
    %c0_i32 = arith.constant 0 : i32
    %c0_i32_0 = arith.constant 0 : i32
    return %arg0, %c0_i32 : i32, i32
  }
}

</mosaic_0001>

<bundles_post_ra>
// kernel: tpu_custom_call.1
= control target key start
LH: loop header
LB: loop body
LE: loop exit
PB: predicated region body
PF: predicated region fallthrough
CT: control target
= control target key end

     0   :  { %7 = vsyncpa [#allocation3], 0  ;;  %s681_s0 = inlined_call_operand.hbm [shape: bf16[128,128], index: 0, kind: input, shape index: {}]   ;;  %s682_s1 = inlined_call_operand.hbm [shape: bf16[128,128], index: 1, kind: input, shape index: {}]   ;;  %s683_s2 = inlined_call_operand.hbm [shape: bf16[128,128], index: 2, kind: output, shape index: {}]  }
   0x1   :  { %8 = vsyncpa [#allocation6], 0 }
   0x2   :  { %9 = vsyncpa [#allocation4], 0  ;;  %s616_s9 = smov [#allocation2]   ;;  %s544_s13 = scalar_lea.hbm %s681_s0, 1024 }
   0x3   :  { %s15_s10 = sshll.u32 %s616_s9, 4  ;;  %p545_p0 = scmp.ne.s32.totalorder %s681_s0, %s544_s13  ;;  %s16_s10 = int_to_ptr.vmem [resolvable:$true] %s15_s10 }
   0x4   :  { %p548_p1 = scmp.lt.u32.totalorder %s544_s13, %s681_s0 }
   0x6   :  { %p550_p2 = pnand %p548_p1, %p545_p0 }
   0x8   :  { %553 = shalt.err (!%p550_p2)
}
   0x9   :  { %s554_s18 = scalar_lea.vmem %s16_s10, 1024  ;;  %p559_p4 = scmp.lt.s32.totalorder %s16_s10, %s16_s10 }
   0xa   :  { %p555_p3 = scmp.ne.s32.totalorder %s16_s10, %s554_s18  ;;  %p560_p5 = scmp.lt.s32.totalorder %s554_s18, %s554_s18 }
   0xc   :  { %p561_p6 = por %p560_p5, %p559_p4 }
   0xe   :  { %p562_p7 = pnand %p561_p6, %p555_p3 }
  0x10   :  { %565 = shalt.err (!%p562_p7)
}
  0x11   :  { %s617_s19 = smov 64   ;;  %s618_s20 = smov 4  }
  0x12   :  { %21 = dma.hbm_to_vmem [thread:$0]  %s681_s0, 1024, %s16_s10, [#allocation3], %s617_s19, %s617_s19, %s618_s20  }
  0x13   :  { %s619_s23 = smov [#allocation5]   ;;  %s566_s27 = scalar_lea.hbm %s682_s1, 1024 }
  0x14   :  { %s27_s24 = sshll.u32 %s619_s23, 4  ;;  %p567_p8 = scmp.ne.s32.totalorder %s682_s1, %s566_s27  ;;  %s28_s24 = int_to_ptr.vmem [resolvable:$true] %s27_s24 }
  0x15   :  { %p570_p9 = scmp.lt.u32.totalorder %s566_s27, %s682_s1 }
  0x17   :  { %p572_p10 = pnand %p570_p9, %p567_p8 }
  0x19   :  { %575 = shalt.err (!%p572_p10)
}
  0x1a   :  { %s576_s4 = scalar_lea.vmem %s28_s24, 1024  ;;  %p581_p12 = scmp.lt.s32.totalorder %s28_s24, %s28_s24 }
  0x1b   :  { %p577_p11 = scmp.ne.s32.totalorder %s28_s24, %s576_s4  ;;  %p582_p13 = scmp.lt.s32.totalorder %s576_s4, %s576_s4 }
  0x1d   :  { %p583_p0 = por %p582_p13, %p581_p12 }
  0x1f   :  { %p584_p1 = pnand %p583_p0, %p577_p11 }
  0x21   :  { %587 = shalt.err (!%p584_p1)
}
  0x22   :  { %33 = dma.hbm_to_vmem [thread:$0]  %s682_s1, 1024, %s28_s24, [#allocation6], %s617_s19, %s617_s19, %s618_s20  }
  0x23   :  { %610 = dma.done.wait [#allocation3], 1024  }
  0x24   :  { %611 = vsyncadd [#allocation3], 4294966272 }
  0x25   :  { %612 = dma.done.wait [#allocation6], 1024  }
  0x26   :  { %613 = vsyncadd [#allocation6], 4294966272  ;;  %v528_v0 = vld [vmem:[#allocation5] sm:$0xff]   ;;  %v529_v1 = vld [vmem:[#allocation5 + $0x8] sm:$0xff]   ;;  %s620_s1 = smov [#allocation7]  }
  0x27   :  { %475 = vmatprep.subr.bf16.mxu0 %v528_v0  ;;  %507 = vmatprep.subr.bf16.mxu1 %v528_v0  ;;  %v530_v2 = vld [vmem:[#allocation5 + $0x10] sm:$0xff]   ;;  %v531_v3 = vld [vmem:[#allocation5 + $0x18] sm:$0xff]   ;;  %v536_v4 = vld [vmem:[#allocation2] sm:$0xff]   ;;  %s351_s6 = sshll.u32 %s620_s1, 4  ;;  %s352_s6 = int_to_ptr.vmem [resolvable:$true] %s351_s6 }
  0x28   :  { %476 = vmatpush3.bf16.msra.mxu0 %v528_v0  ;;  %515 = vmatpush3.bf16.msra.mxu1 %v528_v0  ;;  %v537_v5 = vld [vmem:[#allocation2 + $0x20] sm:$0xff]   ;;  %v533_v7 = vld [vmem:[#allocation5 + $0x28] sm:$0xff]   ;;  %v534_v8 = vld [vmem:[#allocation5 + $0x30] sm:$0xff]   ;;  %s588_s7 = scalar_lea.vmem %s352_s6, 1024  ;;  %p593_p3 = scmp.lt.s32.totalorder %s352_s6, %s352_s6 }
  0x29   :  { %477 = vmatprep.subr.bf16.mxu0 %v529_v1  ;;  %508 = vmatprep.subr.bf16.mxu1 %v529_v1  ;;  %v532_v6 = vld [vmem:[#allocation5 + $0x20] sm:$0xff]   ;;  %v535_v9 = vld [vmem:[#allocation5 + $0x38] sm:$0xff]   ;;  %v538_v10 = vld [vmem:[#allocation2 + $0x8] sm:$0xff]   ;;  %p589_p2 = scmp.ne.s32.totalorder %s352_s6, %s588_s7  ;;  %p594_p4 = scmp.lt.s32.totalorder %s588_s7, %s588_s7 }
  0x2a   :  { %491 = vmatprep.mubr.bf16.mxu0 %v536_v4  ;;  %499 = vmatprep.mubr.bf16.mxu1 %v537_v5  ;;  %v539_v11 = vld [vmem:[#allocation2 + $0x28] sm:$0xff]   ;;  %v540_v12 = vld [vmem:[#allocation2 + $0x10] sm:$0xff]   ;;  %v542_v14 = vld [vmem:[#allocation2 + $0x18] sm:$0xff]  }
  0x2b   :  { %v541_v13 = vld [vmem:[#allocation2 + $0x30] sm:$0xff]   ;;  %v543_v15 = vld [vmem:[#allocation2 + $0x38] sm:$0xff]   ;;  %p595_p5 = por %p594_p4, %p593_p3 }
  0x2c   :  { %478 = vmatpush3.bf16.msra.mxu0 %v529_v1  ;;  %516 = vmatpush3.bf16.msra.mxu1 %v529_v1 }
  0x2d   :  { %479 = vmatprep.subr.bf16.mxu0 %v530_v2  ;;  %509 = vmatprep.subr.bf16.mxu1 %v530_v2  ;;  %p596_p6 = pnand %p595_p5, %p589_p2 }
  0x30   :  { %480 = vmatpush3.bf16.msra.mxu0 %v530_v2  ;;  %517 = vmatpush3.bf16.msra.mxu1 %v530_v2 }
  0x31   :  { %481 = vmatprep.subr.bf16.mxu0 %v531_v3  ;;  %510 = vmatprep.subr.bf16.mxu1 %v531_v3 }
  0x34   :  { %482 = vmatpush3.bf16.msra.mxu0 %v531_v3  ;;  %518 = vmatpush3.bf16.msra.mxu1 %v531_v3 }
  0x35   :  { %483 = vmatprep.subr.bf16.mxu0 %v532_v6  ;;  %511 = vmatprep.subr.bf16.mxu1 %v532_v6 }
  0x38   :  { %484 = vmatpush3.bf16.msra.mxu0 %v532_v6  ;;  %519 = vmatpush3.bf16.msra.mxu1 %v532_v6 }
  0x39   :  { %485 = vmatprep.subr.bf16.mxu0 %v533_v7  ;;  %512 = vmatprep.subr.bf16.mxu1 %v533_v7 }
  0x3c   :  { %486 = vmatpush3.bf16.msra.mxu0 %v533_v7  ;;  %520 = vmatpush3.bf16.msra.mxu1 %v533_v7 }
  0x3d   :  { %487 = vmatprep.subr.bf16.mxu0 %v534_v8  ;;  %513 = vmatprep.subr.bf16.mxu1 %v534_v8 }
  0x40   :  { %488 = vmatpush3.bf16.msra.mxu0 %v534_v8  ;;  %521 = vmatpush3.bf16.msra.mxu1 %v534_v8 }
  0x41   :  { %489 = vmatprep.subr.bf16.mxu0 %v535_v9  ;;  %514 = vmatprep.subr.bf16.mxu1 %v535_v9 }
  0x44   :  { %490 = vmatpush3.bf16.msra.mxu0 %v535_v9  ;;  %522 = vmatpush3.bf16.msra.mxu1 %v535_v9 }
  0x47   :  { %492 = vmatmul.mubr.bf16.vlgmr.msra.gmra.mrb[0].mxu0 %v538_v10  ;;  %500 = vmatmul.mubr.bf16.vlgmr.msra.gmra.mrb[0].mxu1 %v539_v11 }
  0x48   :  { %495 = vmatprep.mubr.bf16.mxu0 %v540_v12  ;;  %503 = vmatprep.mubr.bf16.mxu1 %v541_v13 }
  0x4f   :  { %496 = vmatmul.mubr.bf16.gmra.mrb[4].mxu0 %v542_v14  ;;  %504 = vmatmul.mubr.bf16.gmra.mrb[4].mxu1 %v543_v15 }
 0x11a   :  { %v493_v16 = vpop.f32.mrb[0].mxu0  ;;  %v501_v17 = vpop.f32.mrb[0].mxu1 }
 0x11b   :  { %v203_v18 = vpop.f32.mrb[1].mxu0  ;;  %v235_v19 = vpop.f32.mrb[1].mxu1 }
 0x11c   :  { %v494_v20 = vpop.f32.mrb[2].mxu0  ;;  %v502_v21 = vpop.f32.mrb[2].mxu1 }
 0x11d   :  { %v420_v22 = vpack.c.bf16 %v494_v20, %v493_v16  ;;  %v440_v23 = vpack.c.bf16 %v502_v21, %v501_v17  ;;  %v206_v24 = vpop.f32.mrb[3].mxu0  ;;  %v238_v25 = vpop.f32.mrb[3].mxu1 }
 0x11e   :  { %v415_v26 = vpack.c.bf16 %v206_v24, %v203_v18  ;;  %v435_v27 = vpack.c.bf16 %v238_v25, %v235_v19 }
 0x11f   :  { %452 = vst [vmem:[#allocation7 + $0x8] sm:$0xff] %v420_v22   ;;  %456 = vst [vmem:[#allocation7 + $0x28] sm:$0xff] %v440_v23  }
 0x120   :  { %416 = vst [vmem:[#allocation7] sm:$0xff] %v415_v26   ;;  %455 = vst [vmem:[#allocation7 + $0x20] sm:$0xff] %v435_v27  }
 0x122   :  { %v497_v28 = vpop.f32.mrb[4].mxu0  ;;  %v505_v29 = vpop.f32.mrb[4].mxu1 }
 0x123   :  { %v219_v30 = vpop.f32.mrb[5].mxu0  ;;  %v251_v31 = vpop.f32.mrb[5].mxu1 }
 0x124   :  { %v498_v32 = vpop.f32.mrb[6].mxu0  ;;  %v506_v33 = vpop.f32.mrb[6].mxu1 }
 0x125   :  { %v430_v34 = vpack.c.bf16 %v498_v32, %v497_v28  ;;  %v450_v35 = vpack.c.bf16 %v506_v33, %v505_v29  ;;  %v222_v36 = vpop.f32.mrb[7].mxu0  ;;  %v254_v37 = vpop.f32.mrb[7].mxu1 }
 0x126   :  { %v425_v38 = vpack.c.bf16 %v222_v36, %v219_v30  ;;  %v445_v39 = vpack.c.bf16 %v254_v37, %v251_v31 }
 0x127   :  { %454 = vst [vmem:[#allocation7 + $0x18] sm:$0xff] %v430_v34   ;;  %458 = vst [vmem:[#allocation7 + $0x38] sm:$0xff] %v450_v35  }
 0x128   :  { %453 = vst [vmem:[#allocation7 + $0x10] sm:$0xff] %v425_v38   ;;  %457 = vst [vmem:[#allocation7 + $0x30] sm:$0xff] %v445_v39  }
 0x129   :  { %599 = shalt.err (!%p596_p6)
}
 0x12a   :  { %s600_s10 = scalar_lea.hbm %s683_s2, 1024 }
 0x12b   :  { %p601_p7 = scmp.ne.s32.totalorder %s683_s2, %s600_s10  ;;  %p604_p8 = scmp.lt.u32.totalorder %s600_s10, %s683_s2 }
 0x12d   :  { %p606_p9 = pnand %p604_p8, %p601_p7 }
 0x12f   :  { %609 = shalt.err (!%p606_p9)
}
 0x130   :  { %357 = dma.vmem_to_hbm [thread:$0]  %s352_s6, 1024, %s683_s2, [#allocation4], %s617_s19, %s617_s19, %s618_s20  }
 0x131   :  { %614 = dma.done.wait [#allocation4], 1024  }
 0x132   :  { %615 = vsyncadd [#allocation4], 4294966272 }
 0x133   :  { %361 = vsyncpa [#allocation3], 1 }
 0x134   :  { %362 = vsyncpa [#allocation6], 1 }
 0x135   :  { %363 = vsyncpa [#allocation4], 1 }

</bundles_post_ra>
